<compile_context>
chip_gen: v7x
topology: tpu7x:2x2x1
jax: 0.10.0
libtpu: 0.0.40
codegen_flags: <defaults>
</compile_context>

<pallas_src>
import numpy as np
import jax
import jax.numpy as jnp
from jax.experimental import pallas as pl
from jax.experimental.pallas import tpu as pltpu

_LANE = 128
_SUBLANE = 8


def _round_up(x, m):
    return (x + m - 1) // m * m


def _per_step_vmem_bytes(tb, tc, d_pad):
    """Conservative per-grid-step VMEM footprint (double-buffered tiles)."""
    inputs = 2 * (2 * d_pad * tc * 4)   # cbT + wT tiles, double buffered
    out = 2 * (tb * tc * 4)             # output tile, double buffered
    idx = 2 * (tb * _LANE * 4)          # idx tile (K padded to a full lane)
    scratch = tc * 4                    # score scratch
    return inputs + out + idx + scratch


def _num_tensorcores_per_chip():
    """Best-effort detection: 2 TCs/chip on v7x, 1 elsewhere."""
    try:
        kind = jax.devices()[0].device_kind.lower()
        if "v7" in kind or "7x" in kind:
            return 2
    except Exception:
        pass
    return 1


def _reasoning_attention_kernel(cbT_ref, wT_ref, idx_ref, out_ref, s_ref):
    # cbT_ref/wT_ref: (D_pad, TC) f32   -- C on lanes, D on sublanes
    # idx_ref:        (TB, K)     i32   -- batch tile of sampled indices
    # out_ref:        (TB, TC)    f32
    # s_ref:          (1, TC)     f32   -- per-C-tile score scratch
    ci = pl.program_id(0)   # C-tile index (outer, "parallel")
    bi = pl.program_id(1)   # B-tile index (inner, "arbitrary")

    # Factored reduction: compute the (1, TC) score vector once per C tile.
    # (bi is the innermost, in-order axis, so the scratch stays valid for all
    #  B tiles of the current C tile.)
    @pl.when(bi == 0)
    def _():
        s_ref[...] = jnp.sum(cbT_ref[...] * wT_ref[...], axis=0, keepdims=True)

    tb, k = idx_ref.shape
    tc = out_ref.shape[1]

    # mask[b, c] = True iff global concept id c is in idx[b, :] (dups OK).
    cids = ci * tc + jax.lax.broadcasted_iota(jnp.int32, (tb, tc), 1)
    idx = idx_ref[...]
    m = cids == idx[:, 0:1]
    for kk in range(1, k):  # K is small and static -> unrolled compare+or
        m = m | (cids == idx[:, kk:kk + 1])

    s = jnp.broadcast_to(s_ref[...], (tb, tc))
    out_ref[...] = jnp.where(m, s, 0.0)


def reasoning_attention(cb, attention_w, sampled_idx, *, tb=None, tc=None,
                        vmem_budget_bytes=12 << 20):
    """Pallas wrapper. cb/attention_w: (C, D) f32, sampled_idx: (B, K) int."""
    C, D = cb.shape
    B, K = sampled_idx.shape

    D_pad = _round_up(D, _SUBLANE)
    C_pad = _round_up(C, _LANE)          # pad to 128, NOT to tc
    B_pad = _round_up(B, _SUBLANE)

    # --- batch tile: default is the whole (padded) batch -> one B step ------
    if tb is None:
        tb = B_pad
    else:
        tb = _round_up(min(tb, B_pad), _SUBLANE)

    # --- concept tile: largest 128-multiple divisor of C_pad that fits the ---
    # --- VMEM budget; keep >= num_tensorcores tiles so "parallel" ci shards ---
    m = C_pad // _LANE
    min_c_tiles = min(_num_tensorcores_per_chip(), m)
    if tc is None:
        divisors = [d for d in range(1, m + 1) if m % d == 0]
        cands = [d for d in divisors if d >= min_c_tiles] or [divisors[-1]]
        tc = C_pad // cands[-1]          # fallback: smallest tile
        for d in cands:                  # fewest tiles first (largest tc)
            tc_try = C_pad // d
            if _per_step_vmem_bytes(tb, tc_try, D_pad) <= vmem_budget_bytes:
                tc = tc_try
                break
    else:
        tc = _round_up(min(tc, C_pad), _LANE)
    C_pad = _round_up(C_pad, tc)

    # If the output tile alone still blows the budget (huge B), shrink tb.
    while tb > _SUBLANE and _per_step_vmem_bytes(tb, tc, D_pad) > vmem_budget_bytes:
        tb = _round_up(tb // 2, _SUBLANE)
    B_pad = _round_up(B, tb)

    # --- wrapper-side layout plumbing (skipped entirely when aligned) -------
    cbT = jnp.asarray(cb, jnp.float32).T
    wT = jnp.asarray(attention_w, jnp.float32).T
    if (D_pad, C_pad) != (D, C):
        pad = ((0, D_pad - D), (0, C_pad - C))
        cbT = jnp.pad(cbT, pad)
        wT = jnp.pad(wT, pad)
    idx = jnp.asarray(sampled_idx, jnp.int32)
    if B_pad != B:
        # Padded batch rows get -1 so they never match a concept id.
        idx = jnp.pad(idx, ((0, B_pad - B), (0, 0)), constant_values=-1)

    grid = (C_pad // tc, B_pad // tb)

    per_step = _per_step_vmem_bytes(tb, tc, D_pad)
    vmem_limit = int(min(48 << 20, max(2 * per_step, 16 << 20)))

    cost = pl.CostEstimate(
        flops=2 * C_pad * D_pad + B_pad * C_pad,
        transcendentals=0,
        bytes_accessed=2 * D_pad * C_pad * 4 + B_pad * K * 4 + B_pad * C_pad * 4,
    )

    out = pl.pallas_call(
        _reasoning_attention_kernel,
        out_shape=jax.ShapeDtypeStruct((B_pad, C_pad), jnp.float32),
        grid_spec=pltpu.PrefetchScalarGridSpec(
            num_scalar_prefetch=0,
            grid=grid,
            in_specs=[
                # cb/W blocks depend only on the C tile -> no re-DMA across B.
                pl.BlockSpec((D_pad, tc), lambda ci, bi: (0, ci)),
                pl.BlockSpec((D_pad, tc), lambda ci, bi: (0, ci)),
                # Tiny index block; depends only on bi -> DMA'd once per B tile.
                pl.BlockSpec((tb, K), lambda ci, bi: (bi, 0)),
            ],
            out_specs=pl.BlockSpec((tb, tc), lambda ci, bi: (bi, ci)),
            scratch_shapes=[pltpu.VMEM((1, tc), jnp.float32)],
        ),
        compiler_params=pltpu.CompilerParams(
            # C axis parallel (megacore on v7x); B axis arbitrary so the
            # per-C-tile score scratch (computed at bi == 0) stays valid.
            dimension_semantics=("parallel", "arbitrary"),
            vmem_limit_bytes=vmem_limit,
        ),
        cost_estimate=cost,
    )(cbT, wT, idx)

    return out[:B, :C]


if __name__ == "__main__":
    nconcepts, cdim = 1024, 32
    batch, k = 32, 4

    key = jax.random.PRNGKey(0)
    k_w, k_cb, k_idx = jax.random.split(key, 3)

    # Deterministic xavier-uniform init for the attention parameter.
    bound = float(np.sqrt(6.0 / (nconcepts + cdim)))
    attention_w = jax.random.uniform(
        k_w, (nconcepts, cdim), jnp.float32, minval=-bound, maxval=bound)

    cb = jax.random.normal(k_cb, (nconcepts, cdim), dtype=jnp.float32)
    sampled_idx = jax.random.randint(
        k_idx, (batch, k), 0, nconcepts, dtype=jnp.int32)

    # Default tiling: tb = whole batch, tc = whole (padded) concept axis on
    # single-TC chips -> grid=(1,1); on v7x the C axis keeps 2 parallel tiles.
    out = reasoning_attention(cb, attention_w, sampled_idx)
    out = jax.block_until_ready(out)

    # Plain-JAX reference with identical semantics.
    mask_ref = jnp.max(jax.nn.one_hot(sampled_idx, nconcepts,
                                      dtype=jnp.float32), axis=1)      # (B, C)
    ref = mask_ref * jnp.sum(cb * attention_w, axis=1)[None, :]        # (B, C)

    assert out.shape == (batch, nconcepts)
    np.testing.assert_allclose(np.asarray(out), np.asarray(ref),
                               rtol=1e-5, atol=1e-5)
    print("KERNEL_OK")
</pallas_src>

<mosaic_0001>
module attributes {stable_mosaic.version = 11 : i64} {
  func.func @_reasoning_attention_kernel(%arg0: i32, %arg1: i32, %arg2: memref<32x1024xf32, #tpu.memory_space<vmem>>, %arg3: memref<32x1024xf32, #tpu.memory_space<vmem>>, %arg4: memref<32x4xi32, #tpu.memory_space<vmem>>, %arg5: memref<32x1024xf32, #tpu.memory_space<vmem>>, %arg6: memref<1x1024xf32, #tpu.memory_space<vmem>>) attributes {dimension_semantics = [#tpu.dimension_semantics<parallel>, #tpu.dimension_semantics<arbitrary>], iteration_bounds = array<i64: 1, 1>, scalar_prefetch = 0 : i64, scratch_operands = 1 : i64, tpu.core_type = #tpu.core_type<tc>, window_params = [{transform_indices = @transform_0, window_bounds = array<i64: 32, 1024>}, {transform_indices = @transform_1, window_bounds = array<i64: 32, 1024>}, {transform_indices = @transform_2, window_bounds = array<i64: 32, 4>}, {transform_indices = @transform_3, window_bounds = array<i64: 32, 1024>}]} {
    %c0_i32 = arith.constant 0 : i32
    %0 = arith.cmpi eq, %arg1, %c0_i32 : i32
    %1 = arith.extui %0 : i1 to i32
    %c0_i32_0 = arith.constant 0 : i32
    %2 = arith.cmpi ne, %1, %c0_i32_0 : i32
    scf.if %2 {
      %c0_6 = arith.constant 0 : index
      %c0_7 = arith.constant 0 : index
      %29 = vector.load %arg2[%c0_6, %c0_7] : memref<32x1024xf32, #tpu.memory_space<vmem>>, vector<32x1024xf32>
      %c0_8 = arith.constant 0 : index
      %c0_9 = arith.constant 0 : index
      %30 = vector.load %arg3[%c0_8, %c0_9] : memref<32x1024xf32, #tpu.memory_space<vmem>>, vector<32x1024xf32>
      %31 = arith.mulf %29, %30 : vector<32x1024xf32>
      %cst_10 = arith.constant dense<0.000000e+00> : vector<1024xf32>
      %32 = vector.multi_reduction <add>, %31, %cst_10 [0] : vector<32x1024xf32> to vector<1024xf32>
      %33 = vector.shape_cast %32 : vector<1024xf32> to vector<1x1024xf32>
      %c0_11 = arith.constant 0 : index
      %c0_12 = arith.constant 0 : index
      %34 = vector.load %arg6[%c0_11, %c0_12] : memref<1x1024xf32, #tpu.memory_space<vmem>>, vector<1x1024xf32>
      tpu.vector_store %arg6[%c0_11, %c0_12], %33 {strides = array<i32>} : memref<1x1024xf32, #tpu.memory_space<vmem>>, vector<1x1024xf32>,
    } else {
    }
    %c1024_i32 = arith.constant 1024 : i32
    %3 = arith.muli %arg0, %c1024_i32 : i32
    %4 = tpu.iota {dimensions = array<i32: 1>} : vector<32x1024xi32>
    %5 = vector.broadcast %3 : i32 to vector<32x1024xi32>
    %6 = arith.addi %5, %4 : vector<32x1024xi32>
    %c0 = arith.constant 0 : index
    %c0_1 = arith.constant 0 : index
    %7 = vector.load %arg4[%c0, %c0_1] : memref<32x4xi32, #tpu.memory_space<vmem>>, vector<32x4xi32>
    %8 = vector.extract_strided_slice %7 {offsets = [0, 0], sizes = [32, 1], strides = [1, 1]} : vector<32x4xi32> to vector<32x1xi32>
    %9 = vector.broadcast %8 : vector<32x1xi32> to vector<32x1024xi32>
    %10 = arith.cmpi eq, %6, %9 : vector<32x1024xi32>
    %11 = vector.extract_strided_slice %7 {offsets = [0, 1], sizes = [32, 1], strides = [1, 1]} : vector<32x4xi32> to vector<32x1xi32>
    %12 = vector.broadcast %11 : vector<32x1xi32> to vector<32x1024xi32>
    %13 = arith.cmpi eq, %6, %12 : vector<32x1024xi32>
    %14 = arith.ori %10, %13 : vector<32x1024xi1>
    %15 = vector.extract_strided_slice %7 {offsets = [0, 2], sizes = [32, 1], strides = [1, 1]} : vector<32x4xi32> to vector<32x1xi32>
    %16 = vector.broadcast %15 : vector<32x1xi32> to vector<32x1024xi32>
    %17 = arith.cmpi eq, %6, %16 : vector<32x1024xi32>
    %18 = arith.ori %14, %17 : vector<32x1024xi1>
    %19 = vector.extract_strided_slice %7 {offsets = [0, 3], sizes = [32, 1], strides = [1, 1]} : vector<32x4xi32> to vector<32x1xi32>
    %20 = vector.broadcast %19 : vector<32x1xi32> to vector<32x1024xi32>
    %21 = arith.cmpi eq, %6, %20 : vector<32x1024xi32>
    %22 = arith.ori %18, %21 : vector<32x1024xi1>
    %c0_2 = arith.constant 0 : index
    %c0_3 = arith.constant 0 : index
    %23 = vector.load %arg6[%c0_2, %c0_3] : memref<1x1024xf32, #tpu.memory_space<vmem>>, vector<1x1024xf32>
    %24 = vector.shape_cast %23 : vector<1x1024xf32> to vector<1x1024xf32>
    %25 = vector.broadcast %24 : vector<1x1024xf32> to vector<32x1024xf32>
    %cst = arith.constant 0.000000e+00 : f32
    %26 = vector.broadcast %cst : f32 to vector<32x1024xf32>
    %27 = arith.select %22, %25, %26 : vector<32x1024xi1>, vector<32x1024xf32>
    %c0_4 = arith.constant 0 : index
    %c0_5 = arith.constant 0 : index
    %28 = vector.load %arg5[%c0_4, %c0_5] : memref<32x1024xf32, #tpu.memory_space<vmem>>, vector<32x1024xf32>
    tpu.vector_store %arg5[%c0_4, %c0_5], %27 {strides = array<i32>} : memref<32x1024xf32, #tpu.memory_space<vmem>>, vector<32x1024xf32>,
    return
  }
  func.func @transform_0(%arg0: i32, %arg1: i32) -> (i32, i32) {
    %c0_i32 = arith.constant 0 : i32
    %c0_i32_0 = arith.constant 0 : i32
    return %c0_i32, %arg0 : i32, i32
  }
  func.func @transform_1(%arg0: i32, %arg1: i32) -> (i32, i32) {
    %c0_i32 = arith.constant 0 : i32
    %c0_i32_0 = arith.constant 0 : i32
    return %c0_i32, %arg0 : i32, i32
  }
  func.func @transform_2(%arg0: i32, %arg1: i32) -> (i32, i32) {
    %c0_i32 = arith.constant 0 : i32
    %c0_i32_0 = arith.constant 0 : i32
    return %arg1, %c0_i32 : i32, i32
  }
  func.func @transform_3(%arg0: i32, %arg1: i32) -> (i32, i32) {
    %c0_i32 = arith.constant 0 : i32
    return %arg1, %arg0 : i32, i32
  }
}

</mosaic_0001>

<bundles_post_ra>
// kernel: tpu_custom_call.1
= control target key start
LH: loop header
LB: loop body
LE: loop exit
PB: predicated region body
PF: predicated region fallthrough
CT: control target
= control target key end

     0   :  { %8 = vsyncpa [#allocation4], 0  ;;  %s1648_s0 = inlined_call_operand.hbm [shape: f32[32,1024], index: 0, kind: input, shape index: {}]   ;;  %s1649_s1 = inlined_call_operand.hbm [shape: f32[32,1024], index: 1, kind: input, shape index: {}]   ;;  %s1650_s2 = inlined_call_operand.vmem [shape: s32[32,4], index: 2, kind: input, shape index: {}]   ;;  %s1651_s3 = inlined_call_operand.hbm [shape: f32[32,1024], index: 3, kind: output, shape index: {}]  }
   0x1   :  { %9 = vsyncpa [#allocation7], 0 }
   0x2   :  { %10 = vsyncpa [#allocation5], 0  ;;  %s783_s12 = smov [#allocation3]   ;;  %s711_s16 = scalar_lea.hbm %s1648_s0, 4096 }
   0x3   :  { %s16_s13 = sshll.u32 %s783_s12, 4  ;;  %p712_p0 = scmp.ne.s32.totalorder %s1648_s0, %s711_s16  ;;  %s17_s13 = int_to_ptr.vmem [resolvable:$true] %s16_s13 }
   0x4   :  { %p715_p1 = scmp.lt.u32.totalorder %s711_s16, %s1648_s0 }
   0x6   :  { %p717_p2 = pnand %p715_p1, %p712_p0 }
   0x8   :  { %720 = shalt.err (!%p717_p2)
}
   0x9   :  { %s721_s21 = scalar_lea.vmem %s17_s13, 4096  ;;  %p726_p4 = scmp.lt.s32.totalorder %s17_s13, %s17_s13 }
   0xa   :  { %p722_p3 = scmp.ne.s32.totalorder %s17_s13, %s721_s21  ;;  %p727_p5 = scmp.lt.s32.totalorder %s721_s21, %s721_s21 }
   0xc   :  { %p728_p6 = por %p727_p5, %p726_p4 }
   0xe   :  { %p729_p7 = pnand %p728_p6, %p722_p3 }
  0x10   :  { %732 = shalt.err (!%p729_p7)
}
  0x11   :  { %s784_s22 = smov 1024   ;;  %s785_s23 = smov 64  }
  0x12   :  { %22 = dma.hbm_to_vmem [thread:$0]  %s1648_s0, 4096, %s17_s13, [#allocation4], %s784_s22, %s784_s22, %s785_s23  }
  0x13   :  { %s786_s26 = smov [#allocation6]   ;;  %s733_s30 = scalar_lea.hbm %s1649_s1, 4096 }
  0x14   :  { %s28_s27 = sshll.u32 %s786_s26, 4  ;;  %p734_p8 = scmp.ne.s32.totalorder %s1649_s1, %s733_s30  ;;  %s29_s27 = int_to_ptr.vmem [resolvable:$true] %s28_s27 }
  0x15   :  { %p737_p9 = scmp.lt.u32.totalorder %s733_s30, %s1649_s1 }
  0x17   :  { %p739_p10 = pnand %p737_p9, %p734_p8 }
  0x19   :  { %742 = shalt.err (!%p739_p10)
}
  0x1a   :  { %s743_s8 = scalar_lea.vmem %s29_s27, 4096  ;;  %p748_p12 = scmp.lt.s32.totalorder %s29_s27, %s29_s27 }
  0x1b   :  { %p744_p11 = scmp.ne.s32.totalorder %s29_s27, %s743_s8  ;;  %p749_p13 = scmp.lt.s32.totalorder %s743_s8, %s743_s8 }
  0x1d   :  { %p750_p0 = por %p749_p13, %p748_p12 }
  0x1f   :  { %p751_p1 = pnand %p750_p0, %p744_p11 }
  0x21   :  { %754 = shalt.err (!%p751_p1)
}
  0x22   :  { %34 = dma.hbm_to_vmem [thread:$0]  %s1649_s1, 4096, %s29_s27, [#allocation7], %s784_s22, %s784_s22, %s785_s23  }
  0x23   :  { %777 = dma.done.wait [#allocation4], 4096  }
  0x24   :  { %778 = vsyncadd [#allocation4], 4294963200 }
  0x25   :  { %779 = dma.done.wait [#allocation7], 4096  }
  0x26   :  { %780 = vsyncadd [#allocation7], 4294963200  ;;  %v787_v0 = vmov 0   ;;  %v295_v1 = vld [vmem:[%s1650_s2 + $0x10] sm:$0xff]  ;;  %v293_v2 = vld [vmem:[%s1650_s2] sm:$0xff]  ;;  %v788_v5 = vmov 1  }
  0x27   :  { %704 = vset.pattern.permute.xlu1 %v787_v0  ;;  %703 = vset.pattern.permute.xlu0 %v787_v0  ;;  %v296_v3 = vld [vmem:[%s1650_s2 + $0x18] sm:$0xff]  ;;  %v294_v4 = vld [vmem:[%s1650_s2 + $0x8] sm:$0xff]  ;;  %v789_v6 = vmov 2   ;;  %v790_v7 = vmov 3   ;;  %v47_v8 = vld [vmem:[#allocation3] sm:$0xff]  ;;  %s792_s2 = smov [#allocation8]  }
  0x28   :  { %304 = vperm.xlu1 %704, %v295_v1   ;;  %298 = vperm.xlu0 %703, %v293_v2   ;;  %v48_v9 = vld [vmem:[#allocation3 + $0x8] sm:$0xff]  ;;  %v49_v10 = vld [vmem:[#allocation3 + $0x10] sm:$0xff]  ;;  %v50_v11 = vld [vmem:[#allocation3 + $0x18] sm:$0xff]  ;;  %s680_s17 = sshll.u32 %s792_s2, 4  ;;  %s681_s17 = int_to_ptr.vmem [resolvable:$true] %s680_s17 }
  0x29   :  { %v79_v12 = vld [vmem:[#allocation6] sm:$0xff]  ;;  %v80_v13 = vld [vmem:[#allocation6 + $0x8] sm:$0xff]  ;;  %v53_v16 = vld [vmem:[#allocation3 + $0x30] sm:$0xff]  ;;  %s755_s18 = scalar_lea.vmem %s681_s17, 4096  ;;  %p760_p3 = scmp.lt.s32.totalorder %s681_s17, %s681_s17 }
  0x2a   :  { %v51_v14 = vld [vmem:[#allocation3 + $0x20] sm:$0xff]  ;;  %v52_v15 = vld [vmem:[#allocation3 + $0x28] sm:$0xff]  ;;  %v81_v18 = vld [vmem:[#allocation6 + $0x10] sm:$0xff]  ;;  %v111_v48 = vmul.f32 %v79_v12, %v47_v8  ;;  %v112_v49 = vmul.f32 %v80_v13, %v48_v9  ;;  %p756_p2 = scmp.ne.s32.totalorder %s681_s17, %s755_s18  ;;  %p761_p4 = scmp.lt.s32.totalorder %s755_s18, %s755_s18 }
  0x2b   :  { %v55_v17 = vld [vmem:[#allocation3 + $0x40] sm:$0xff]  ;;  %v82_v19 = vld [vmem:[#allocation6 + $0x18] sm:$0xff]  ;;  %v56_v22 = vld [vmem:[#allocation3 + $0x48] sm:$0xff]  ;;  %v113_v50 = vmul.f32 %v81_v18, %v49_v10 }
  0x2c   :  { %307 = vperm.xlu1 %704, %v296_v3   ;;  %301 = vperm.xlu0 %703, %v294_v4   ;;  %v83_v20 = vld [vmem:[#allocation6 + $0x20] sm:$0xff]  ;;  %v54_v21 = vld [vmem:[#allocation3 + $0x38] sm:$0xff]  ;;  %v57_v23 = vld [vmem:[#allocation3 + $0x50] sm:$0xff]  ;;  %v114_v51 = vmul.f32 %v82_v19, %v50_v11  ;;  %p762_p5 = por %p761_p4, %p760_p3 }
  0x2d   :  { %v58_v24 = vld [vmem:[#allocation3 + $0x58] sm:$0xff]  ;;  %v84_v25 = vld [vmem:[#allocation6 + $0x28] sm:$0xff]  ;;  %v85_v26 = vld [vmem:[#allocation6 + $0x30] sm:$0xff]  ;;  %v115_v56 = vmul.f32 %v83_v20, %v51_v14 }
  0x2e   :  { %v86_v27 = vld [vmem:[#allocation6 + $0x38] sm:$0xff]  ;;  %v59_v28 = vld [vmem:[#allocation3 + $0x60] sm:$0xff]  ;;  %v60_v29 = vld [vmem:[#allocation3 + $0x68] sm:$0xff]  ;;  %v116_v57 = vmul.f32 %v84_v25, %v52_v15  ;;  %v117_v58 = vmul.f32 %v85_v26, %v53_v16  ;;  %p763_p6 = pnand %p762_p5, %p756_p2 }
  0x2f   :  { %v61_v30 = vld [vmem:[#allocation3 + $0x70] sm:$0xff]  ;;  %v62_v31 = vld [vmem:[#allocation3 + $0x78] sm:$0xff]  ;;  %v87_v32 = vld [vmem:[#allocation6 + $0x40] sm:$0xff]  ;;  %v118_v63 = vmul.f32 %v86_v27, %v54_v21 }
  0x30   :  { %706 = vset.pattern.permute.xlu1 %v788_v5  ;;  %705 = vset.pattern.permute.xlu0 %v788_v5  ;;  %v88_v33 = vld [vmem:[#allocation6 + $0x48] sm:$0xff]  ;;  %v89_v34 = vld [vmem:[#allocation6 + $0x50] sm:$0xff]  ;;  %v63_v35 = vld [vmem:[#allocation3 + $0x80] sm:$0xff]  ;;  %v119_v59 = vmul.f32 %v87_v32, %v55_v17 }
  0x31   :  { %345 = vperm.xlu1 %706, %v294_v4   ;;  %342 = vperm.xlu0 %705, %v293_v2   ;;  %v64_v36 = vld [vmem:[#allocation3 + $0x88] sm:$0xff]  ;;  %v65_v37 = vld [vmem:[#allocation3 + $0x90] sm:$0xff]  ;;  %v66_v38 = vld [vmem:[#allocation3 + $0x98] sm:$0xff]  ;;  %v120_v0 = vmul.f32 %v88_v33, %v56_v22 }
  0x32   :  { %v90_v39 = vld [vmem:[#allocation6 + $0x58] sm:$0xff]  ;;  %v91_v40 = vld [vmem:[#allocation6 + $0x60] sm:$0xff]  ;;  %v92_v41 = vld [vmem:[#allocation6 + $0x68] sm:$0xff] }
  0x33   :  { %v67_v42 = vld [vmem:[#allocation3 + $0xa0] sm:$0xff]  ;;  %v68_v43 = vld [vmem:[#allocation3 + $0xa8] sm:$0xff]  ;;  %v69_v44 = vld [vmem:[#allocation3 + $0xb0] sm:$0xff]  ;;  %v123_v8 = vmul.f32 %v91_v40, %v59_v28  ;;  %v124_v9 = vmul.f32 %v92_v41, %v60_v29  ;;  %v143_v28 = vadd.f32 %v119_v59, %v111_v48  ;;  %v152_v33 = vadd.f32 %v120_v0, %v112_v49 }
  0x34   :  { %v93_v45 = vld [vmem:[#allocation6 + $0x70] sm:$0xff]  ;;  %v94_v46 = vld [vmem:[#allocation6 + $0x78] sm:$0xff]  ;;  %v95_v47 = vld [vmem:[#allocation6 + $0x80] sm:$0xff] }
  0x35   :  { %348 = vperm.xlu1 %706, %v295_v1   ;;  %351 = vperm.xlu0 %705, %v296_v3   ;;  %v70_v52 = vld [vmem:[#allocation3 + $0xb8] sm:$0xff]  ;;  %v96_v53 = vld [vmem:[#allocation6 + $0x88] sm:$0xff]  ;;  %v97_v54 = vld [vmem:[#allocation6 + $0x90] sm:$0xff]  ;;  %v125_v10 = vmul.f32 %v93_v45, %v61_v30  ;;  %v126_v11 = vmul.f32 %v94_v46, %v62_v31  ;;  %v127_v18 = vmul.f32 %v95_v47, %v63_v35 }
  0x36   :  { %v98_v55 = vld [vmem:[#allocation6 + $0x98] sm:$0xff]  ;;  %v99_v60 = vld [vmem:[#allocation6 + $0xa0] sm:$0xff]  ;;  %v100_v61 = vld [vmem:[#allocation6 + $0xa8] sm:$0xff]  ;;  %v128_v19 = vmul.f32 %v96_v53, %v64_v36  ;;  %v129_v20 = vmul.f32 %v97_v54, %v65_v37  ;;  %v179_v40 = vadd.f32 %v123_v8, %v115_v56  ;;  %v188_v41 = vadd.f32 %v124_v9, %v116_v57 }
  0x37   :  { %v101_v62 = vld [vmem:[#allocation6 + $0xb0] sm:$0xff]  ;;  %v75_v12 = vld [vmem:[#allocation3 + $0xe0] sm:$0xff]  ;;  %v76_v13 = vld [vmem:[#allocation3 + $0xe8] sm:$0xff]  ;;  %v130_v21 = vmul.f32 %v98_v55, %v66_v38  ;;  %v131_v25 = vmul.f32 %v99_v60, %v67_v42  ;;  %v132_v26 = vmul.f32 %v100_v61, %v68_v43  ;;  %v197_v35 = vadd.f32 %v125_v10, %v117_v58 }
  0x38   :  { %v73_v5 = vld [vmem:[#allocation3 + $0xd0] sm:$0xff]  ;;  %v78_v15 = vld [vmem:[#allocation3 + $0xf8] sm:$0xff]  ;;  %v103_v16 = vld [vmem:[#allocation6 + $0xc0] sm:$0xff]  ;;  %v133_v27 = vmul.f32 %v101_v62, %v69_v44  ;;  %v206_v36 = vadd.f32 %v126_v11, %v118_v63  ;;  %v144_v48 = vadd.f32 %v143_v28, %v127_v18  ;;  %v153_v53 = vadd.f32 %v152_v33, %v128_v19 }
  0x39   :  { %707 = vset.pattern.permute.xlu1 %v789_v6  ;;  %708 = vset.pattern.permute.xlu0 %v789_v6  ;;  %v74_v6 = vld [vmem:[#allocation3 + $0xd8] sm:$0xff]  ;;  %v77_v14 = vld [vmem:[#allocation3 + $0xf0] sm:$0xff]  ;;  %v104_v17 = vld [vmem:[#allocation6 + $0xc8] sm:$0xff]  ;;  %v189_v49 = vadd.f32 %v188_v41, %v132_v26 }
  0x3a   :  { %418 = vperm.xlu1 %707, %v293_v2   ;;  %421 = vperm.xlu0 %708, %v294_v4   ;;  %v105_v22 = vld [vmem:[#allocation6 + $0xd0] sm:$0xff]  ;;  %v108_v29 = vld [vmem:[#allocation6 + $0xe8] sm:$0xff]  ;;  %v110_v31 = vld [vmem:[#allocation6 + $0xf8] sm:$0xff] }
  0x3b   :  { %v109_v30 = vld [vmem:[#allocation6 + $0xf0] sm:$0xff]  ;;  %v137_v45 = vmul.f32 %v105_v22, %v73_v5  ;;  %v140_v42 = vmul.f32 %v108_v29, %v76_v13  ;;  %v142_v44 = vmul.f32 %v110_v31, %v78_v15 }
  0x3c   :  { %v141_v43 = vmul.f32 %v109_v30, %v77_v14 }
  0x3d   :  { %v190_v61 = vadd.f32 %v189_v49, %v140_v42 }
  0x3e   :  { %424 = vperm.xlu1 %707, %v295_v1   ;;  %709 = vset.pattern.permute.xlu0 %v790_v7 }
  0x3f   :  { %494 = vperm.xlu0 %709, %v293_v2   ;;  %v122_v2 = vmul.f32 %v90_v39, %v58_v24  ;;  %v107_v24 = vld [vmem:[#allocation6 + $0xe0] sm:$0xff]  ;;  %v191_v5 = vrot.slane %v190_v61, 4 }
  0x40   :  { %v139_v47 = vmul.f32 %v107_v24, %v75_v12 }
  0x41   :  { %v170_v39 = vadd.f32 %v122_v2, %v114_v51  ;;  %v192_v13 = vadd.f32 %v191_v5, %v190_v61 }
  0x42   :  { %427 = vperm.xlu1 %707, %v296_v3  }
  0x43   :  { %503 = vperm.xlu0 %709, %v296_v3   ;;  %v71_v3 = vld [vmem:[#allocation3 + $0xc0] sm:$0xff]  ;;  %v171_v55 = vadd.f32 %v170_v39, %v130_v21  ;;  %v193_v21 = vrot.slane %v192_v13, 2  ;;  %v791_v39 = vmov 1966171168  }
  0x44   :  { %v135_v37 = vmul.f32 %v103_v16, %v71_v3 }
  0x45   :  { %v194_v31 = vadd.f32 %v193_v21, %v192_v13  ;;  %v1701_v21 = vmov 0 }
  0x46   :  { %710 = vset.pattern.permute.xlu1 %v790_v7  ;;  %v102_v7 = vld [vmem:[#allocation6 + $0xb8] sm:$0xff]  ;;  %v145_v56 = vadd.f32 %v144_v48, %v135_v37 }
  0x47   :  { %497 = vperm.xlu1 %710, %v294_v4   ;;  %v72_v4 = vld [vmem:[#allocation3 + $0xc8] sm:$0xff]  ;;  %v134_v32 = vmul.f32 %v102_v7, %v70_v52  ;;  %v180_v52 = vadd.f32 %v179_v40, %v131_v25  ;;  %v228_v40 = vunpack.c.l.s4 %v791_v39 }
  0x48   :  { %v136_v38 = vmul.f32 %v104_v17, %v72_v4  ;;  %v146_v0 = vrot.slane %v145_v56, 4 }
  0x49   :  { %v207_v51 = vadd.f32 %v206_v36, %v134_v32  ;;  %v181_v60 = vadd.f32 %v180_v52, %v139_v47 }
  0x4a   :  { %v154_v57 = vadd.f32 %v153_v53, %v136_v38  ;;  %v147_v8 = vadd.f32 %v146_v0, %v145_v56 }
  0x4b   :  { %500 = vperm.xlu1 %710, %v295_v1   ;;  %v121_v1 = vmul.f32 %v89_v34, %v57_v23  ;;  %v106_v23 = vld [vmem:[#allocation6 + $0xd8] sm:$0xff]  ;;  %v208_v63 = vadd.f32 %v207_v51, %v142_v44  ;;  %v182_v4 = vrot.slane %v181_v60, 4  ;;  %v229_v44 = vunpack.c.0.s8 %v228_v40 }
  0x4c   :  { %v138_v46 = vmul.f32 %v106_v23, %v74_v6  ;;  %v148_v16 = vrot.slane %v147_v8, 2  ;;  %v1750_v40 = vmov 0 }
  0x4d   :  { %v161_v34 = vadd.f32 %v121_v1, %v113_v50  ;;  %v198_v50 = vadd.f32 %v197_v35, %v133_v27  ;;  %v155_v1 = vrot.slane %v154_v57, 4  ;;  %v209_v7 = vrot.slane %v208_v63, 4 }
  0x4e   :  { %v172_v59 = vadd.f32 %v171_v55, %v138_v46  ;;  %v183_v12 = vadd.f32 %v182_v4, %v181_v60  ;;  %v149_v26 = vadd.f32 %v148_v16, %v147_v8  ;;  %v195_v46 = vrot.slane %v194_v31, 1 }
  0x4f   :  { %v162_v54 = vadd.f32 %v161_v34, %v129_v20  ;;  %v199_v62 = vadd.f32 %v198_v50, %v141_v43  ;;  %v156_v9 = vadd.f32 %v155_v1, %v154_v57  ;;  %v210_v15 = vadd.f32 %v209_v7, %v208_v63 }
  0x50   :  { %v173_v3 = vrot.slane %v172_v59, 4  ;;  %v184_v20 = vrot.slane %v183_v12, 2  ;;  %v230_v34 = vlaneseq  ;;  %v150_v35 = vrot.slane %v149_v26, 1 }
  0x51   :  { %v163_v58 = vadd.f32 %v162_v54, %v137_v45  ;;  %v200_v6 = vrot.slane %v199_v62, 4  ;;  %v157_v17 = vrot.slane %v156_v9, 2  ;;  %v211_v23 = vrot.slane %v210_v15, 2 }
  0x52   :  { %v174_v11 = vadd.f32 %v173_v3, %v172_v59  ;;  %v185_v30 = vadd.f32 %v184_v20, %v183_v12  ;;  %v863_v48 = vshrl.u32 %v230_v34, 7  ;;  %v151_v53 = vadd.f32 %v150_v35, %v149_v26 }
  0x53   :  { %v164_v2 = vrot.slane %v163_v58, 4  ;;  %v201_v14 = vadd.f32 %v200_v6, %v199_v62  ;;  %v158_v27 = vadd.f32 %v157_v17, %v156_v9  ;;  %v212_v33 = vadd.f32 %v211_v23, %v210_v15 }
  0x54   :  { %v175_v19 = vrot.slane %v174_v11, 2  ;;  %v186_v45 = vrot.slane %v185_v30, 1  ;;  %v196_v50 = vadd.f32 %v195_v46, %v194_v31  ;;  %v232_v60 = vsub.s32 %v229_v44, %v863_v48 }
  0x55   :  { %v165_v10 = vadd.f32 %v164_v2, %v163_v58  ;;  %v202_v22 = vrot.slane %v201_v14, 2  ;;  %v159_v36 = vrot.slane %v158_v27, 1  ;;  %v213_v42 = vrot.slane %v212_v33, 1 }
  0x56   :  { %v176_v29 = vadd.f32 %v175_v19, %v174_v11  ;;  %v187_v49 = vadd.f32 %v186_v45, %v185_v30  ;;  %v867_v58 = vand.u32 127, %v230_v34  ;;  %v1658_v20 = vmov 0 }
  0x57   :  { %v166_v18 = vrot.slane %v165_v10, 2  ;;  %v203_v32 = vadd.f32 %v202_v22, %v201_v14  ;;  %v160_v54 = vadd.f32 %v159_v36, %v158_v27  ;;  %v214_v56 = vadd.f32 %v213_v42, %v212_v33 }
  0x58   :  { %v177_v38 = vrot.slane %v176_v29, 1  ;;  %v225_v63 = vcombine.low %v187_v49, %v196_v50  ;;  %v871_v1 = vadd.s32 128, %v867_v58  ;;  %v874_v2 = vadd.s32 256, %v867_v58 }
  0x59   :  { %v167_v28 = vadd.f32 %v166_v18, %v165_v10  ;;  %v204_v47 = vrot.slane %v203_v32, 1  ;;  %v223_v61 = vcombine.low %v151_v53, %v160_v54  ;;  %v882_v8 = vadd.s32 384, %v867_v58 }
  0x5a   :  { %v178_v52 = vadd.f32 %v177_v38, %v176_v29  ;;  %v247_v6 = vrot.slane %v225_v63, %v232_v60  ;;  %v890_v10 = vadd.s32 512, %v867_v58  ;;  %v896_v11 = vadd.s32 640, %v867_v58 }
  0x5b   :  { %v168_v37 = vrot.slane %v167_v28, 1  ;;  %v205_v51 = vadd.f32 %v204_v47, %v203_v32  ;;  %v233_v4 = vrot.slane %v223_v61, %v232_v60  ;;  %v899_v12 = vadd.s32 768, %v867_v58 }
  0x5c   :  { %v919_v17 = vadd.s32 896, %v867_v58  ;;  %v573_v31 = vsub.s32 0, %v863_v48  ;;  %v577_v34 = vsub.s32 1, %v863_v48  ;;  %v581_v35 = vsub.s32 2, %v863_v48 }
  0x5d   :  { %v169_v55 = vadd.f32 %v168_v37, %v167_v28  ;;  %v226_v0 = vcombine.low %v205_v51, %v214_v56  ;;  %v585_v37 = vsub.s32 3, %v863_v48  ;;  %v589_v45 = vsub.s32 4, %v863_v48 }
  0x5e   :  { %v593_v42 = vsub.s32 5, %v863_v48  ;;  %v1683_v53 = vmov 0  ;;  %v597_v54 = vsub.s32 6, %v863_v48  ;;  %v1707_v23 = vmov 0 }
  0x5f   :  { %v224_v62 = vcombine.low %v169_v55, %v178_v52  ;;  %v254_v7 = vrot.slane %v226_v0, %v232_v60  ;;  %v601_v52 = vsub.s32 7, %v863_v48  ;;  %v1721_v28 = vmov 0 }
  0x60   :  { %v1728_v29 = vmov 0  ;;  %v1737_v33 = vmov 0 }
  0x61   :  { %v240_v5 = vrot.slane %v224_v62, %v232_v60  ;;  %v256_v16 = vcombine.low %v247_v6, %v254_v7 }
  0x63   :  { %v255_v15 = vcombine.low %v233_v4, %v240_v5  ;;  %v270_v27 = vrot.slane %v256_v16, %v232_v60 }
  0x65   :  { %v263_v26 = vrot.slane %v255_v15, %v232_v60 }
  0x67   :  { %v271_v32 = vcombine.low %v263_v26, %v270_v27  ;;  %v1714_v26 = vmov 0  ;;  %v1718_v27 = vmov 0 }
  0x69   :  { %v1015_v46 = vrot.slane %v271_v32, %v573_v31  ;;  %v1025_v44 = vrot.slane %v271_v32, %v577_v34  ;;  %v1035_v55 = vrot.slane %v271_v32, %v581_v35  ;;  %v1041_v49 = vrot.slane %v271_v32, %v585_v37 }
  0x6a   :  { %v1046_v50 = vrot.slane %v271_v32, %v589_v45  ;;  %v1052_v48 = vrot.slane %v271_v32, %v593_v42  ;;  %v1068_v62 = vrot.slane %v271_v32, %v601_v52  ;;  %v1732_v31 = vmov 0 }
  0x6b   :  { %v1744_v34 = vmov 0  ;;  %v1753_v35 = vmov 0  ;;  %v1774_v52 = vmov 0 }
  0xa7   :  { %v855_v24 = vpop.permute.xlu1 %304  ;;  %v857_v25 = vpop.permute.xlu0 %298 }
  0xa8   :  { %vm309_vm0 = vcmp.eq.s32.totalorder %v867_v58, %v857_v25  ;;  %vm310_vm2 = vcmp.eq.s32.totalorder %v871_v1, %v857_v25  ;;  %vm311_vm4 = vcmp.eq.s32.totalorder %v874_v2, %v857_v25  ;;  %vm312_vm6 = vcmp.eq.s32.totalorder %v882_v8, %v857_v25 }
  0xa9   :  { %vm313_vm9 = vcmp.eq.s32.totalorder %v890_v10, %v857_v25  ;;  %vm314_vm12 = vcmp.eq.s32.totalorder %v896_v11, %v857_v25  ;;  %vm315_vm15 = vcmp.eq.s32.totalorder %v899_v12, %v857_v25 }
  0xab   :  { %v859_v41 = vpop.permute.xlu1 %307  ;;  %v861_v43 = vpop.permute.xlu0 %301 }
  0xb0   :  { %v865_v57 = vpop.permute.xlu1 %345  ;;  %v343_v59 = vpop.permute.xlu0 %342 }
  0xb1   :  { %vm353_vm1 = vcmp.eq.s32.totalorder %v867_v58, %v343_v59  ;;  %vm354_vm3 = vcmp.eq.s32.totalorder %v871_v1, %v343_v59  ;;  %vm355_vm5 = vcmp.eq.s32.totalorder %v874_v2, %v343_v59  ;;  %vm356_vm7 = vcmp.eq.s32.totalorder %v882_v8, %v343_v59 }
  0xb2   :  { %vm907_vm8 = vmor %vm309_vm0, %vm353_vm1  ;;  %vm357_vm10 = vcmp.eq.s32.totalorder %v890_v10, %v343_v59  ;;  %vm358_vm13 = vcmp.eq.s32.totalorder %v896_v11, %v343_v59  ;;  %vm359_vm0 = vcmp.eq.s32.totalorder %v899_v12, %v343_v59 }
  0xb3   :  { %vm914_vm11 = vmor %vm310_vm2, %vm354_vm3  ;;  %vm316_vm2 = vcmp.eq.s32.totalorder %v919_v17, %v857_v25  ;;  %vm360_vm3 = vcmp.eq.s32.totalorder %v919_v17, %v343_v59  ;;  %v1058_v59 = vrot.slane %v271_v32, %v597_v54  ;;  %v1725_v25 = vmov 0 }
  0xb4   :  { %v876_v3 = vpop.permute.xlu1 %348  ;;  %v887_v9 = vpop.permute.xlu0 %351  ;;  %vm927_vm14 = vmor %vm311_vm4, %vm355_vm5  ;;  %v1822_v32 = vmov 0 }
  0xb5   :  { %vm937_vm1 = vmor %vm312_vm6, %vm356_vm7 }
  0xb6   :  { %v1659_v20 = vsel %vm937_vm1, 4294967295, %v1658_v20  ;;  %vm947_vm4 = vmor %vm313_vm9, %vm357_vm10 }
  0xb7   :  { %vm953_vm5 = vmor %vm314_vm12, %vm358_vm13 }
  0xb8   :  { %vm958_vm7 = vmor %vm315_vm15, %vm359_vm0 }
  0xb9   :  { %v419_v19 = vpop.permute.xlu1 %418  ;;  %v951_v22 = vpop.permute.xlu0 %421  ;;  %vm963_vm9 = vmor %vm316_vm2, %vm360_vm3 }
  0xba   :  { %vm429_vm6 = vcmp.eq.s32.totalorder %v867_v58, %v419_v19  ;;  %vm430_vm1 = vcmp.eq.s32.totalorder %v871_v1, %v419_v19  ;;  %vm431_vm10 = vcmp.eq.s32.totalorder %v874_v2, %v419_v19  ;;  %vm432_vm12 = vcmp.eq.s32.totalorder %v882_v8, %v419_v19 }
  0xbb   :  { %vm971_vm13 = vmor %vm907_vm8, %vm429_vm6  ;;  %vm433_vm15 = vcmp.eq.s32.totalorder %v890_v10, %v419_v19  ;;  %vm434_vm2 = vcmp.eq.s32.totalorder %v896_v11, %v419_v19  ;;  %vm435_vm8 = vcmp.eq.s32.totalorder %v899_v12, %v419_v19  ;;  %vm436_vm6 = vcmp.eq.s32.totalorder %v919_v17, %v419_v19 }
  0xbc   :  { %vm978_vm0 = vmor %vm914_vm11, %vm430_vm1  ;;  %vm1674_vm11 = vnez %v1659_v20  ;;  %v1696_v19 = vmov 0  ;;  %v1698_v20 = vmov 0 }
  0xbd   :  { %vm986_vm3 = vmor %vm927_vm14, %vm431_vm10  ;;  %v1061_v61 = vpop.permute.xlu1 %424 }
  0xbe   :  { %v495_v39 = vpop.permute.xlu0 %494  ;;  %vm994_vm1 = vmor %vm1674_vm11, %vm432_vm12 }
  0xbf   :  { %vm1002_vm14 = vmor %vm947_vm4, %vm433_vm15  ;;  %vm505_vm12 = vcmp.eq.s32.totalorder %v867_v58, %v495_v39  ;;  %vm506_vm15 = vcmp.eq.s32.totalorder %v871_v1, %v495_v39 }
  0xc0   :  { %vm1009_vm10 = vmor %vm953_vm5, %vm434_vm2  ;;  %vm507_vm2 = vcmp.eq.s32.totalorder %v874_v2, %v495_v39 }
  0xc1   :  { %vm1019_vm4 = vmor %vm958_vm7, %vm435_vm8  ;;  %vm508_vm7 = vcmp.eq.s32.totalorder %v882_v8, %v495_v39  ;;  %v428_v14 = vpop.permute.xlu1 %427 }
  0xc2   :  { %vm1029_vm5 = vmor %vm963_vm9, %vm436_vm6  ;;  %vm509_vm9 = vcmp.eq.s32.totalorder %v890_v10, %v495_v39  ;;  %vm510_vm6 = vcmp.eq.s32.totalorder %v896_v11, %v495_v39  ;;  %v504_v30 = vpop.permute.xlu0 %503 }
  0xc3   :  { %v1684_v53 = vsel %vm1029_vm5, 4294967295, %v1683_v53  ;;  %vm537_vm8 = vmor %vm971_vm13, %vm505_vm12  ;;  %vm511_vm13 = vcmp.eq.s32.totalorder %v899_v12, %v495_v39 }
  0xc4   :  { %vm538_vm11 = vmor %vm978_vm0, %vm506_vm15  ;;  %v611_v51 = vsel %vm537_vm8, %v1015_v46, 0.0  ;;  %vm512_vm0 = vcmp.eq.s32.totalorder %v919_v17, %v495_v39  ;;  %vm377_vm15 = vcmp.eq.s32.totalorder %v867_v58, %v887_v9  ;;  %vm379_vm8 = vcmp.eq.s32.totalorder %v874_v2, %v887_v9 }
  0xc5   :  { %vm539_vm5 = vmor %vm986_vm3, %vm507_vm2  ;;  %v612_v56 = vsel %vm538_vm11, %v1025_v44, 0.0  ;;  %643 = vst [vmem:[#allocation8] sm:$0xff] %v611_v51  ;;  %vm1685_vm2 = vnez %v1684_v53  ;;  %v1747_v39 = vmov 0 }
  0xc6   :  { %vm540_vm12 = vmor %vm994_vm1, %vm508_vm7  ;;  %v613_v60 = vsel %vm539_vm5, %v1035_v55, 0.0  ;;  %644 = vst [vmem:[#allocation8 + $0x8] sm:$0xff] %v612_v56  ;;  %vm378_vm5 = vcmp.eq.s32.totalorder %v871_v1, %v887_v9  ;;  %vm333_vm7 = vcmp.eq.s32.totalorder %v867_v58, %v859_v41  ;;  %v498_v42 = vpop.permute.xlu1 %497  ;;  %v1778_v56 = vmov 0 }
  0xc7   :  { %vm541_vm3 = vmor %vm1002_vm14, %vm509_vm9  ;;  %v614_v63 = vsel %vm540_vm12, %v1041_v49, 0.0  ;;  %645 = vst [vmem:[#allocation8 + $0x10] sm:$0xff] %v613_v60  ;;  %vm380_vm9 = vcmp.eq.s32.totalorder %v882_v8, %v887_v9 }
  0xc8   :  { %vm542_vm1 = vmor %vm1009_vm10, %vm510_vm6  ;;  %v615_v0 = vsel %vm541_vm3, %v1046_v50, 0.0  ;;  %646 = vst [vmem:[#allocation8 + $0x18] sm:$0xff] %v614_v63  ;;  %vm335_vm6 = vcmp.eq.s32.totalorder %v874_v2, %v859_v41  ;;  %vm382_vm3 = vcmp.eq.s32.totalorder %v896_v11, %v887_v9  ;;  %v1784_v63 = vmov 0 }
  0xc9   :  { %vm543_vm14 = vmor %vm1019_vm4, %vm511_vm13  ;;  %v616_v4 = vsel %vm542_vm1, %v1052_v48, 0.0  ;;  %647 = vst [vmem:[#allocation8 + $0x20] sm:$0xff] %v615_v0  ;;  %vm334_vm4 = vcmp.eq.s32.totalorder %v871_v1, %v859_v41  ;;  %vm381_vm13 = vcmp.eq.s32.totalorder %v890_v10, %v887_v9 }
  0xca   :  { %vm544_vm10 = vmor %vm1685_vm2, %vm512_vm0  ;;  %v617_v5 = vsel %vm543_vm14, %v1058_v59, 0.0  ;;  %648 = vst [vmem:[#allocation8 + $0x28] sm:$0xff] %v616_v4  ;;  %vm336_vm0 = vcmp.eq.s32.totalorder %v882_v8, %v859_v41  ;;  %vm361_vm14 = vcmp.eq.s32.totalorder %v867_v58, %v865_v57 }
  0xcb   :  { %v618_v6 = vsel %vm544_vm10, %v1068_v62, 0.0  ;;  %649 = vst [vmem:[#allocation8 + $0x30] sm:$0xff] %v617_v5  ;;  %vm1097_vm11 = vmor %vm333_vm7, %vm377_vm15  ;;  %vm317_vm15 = vcmp.eq.s32.totalorder %v867_v58, %v861_v43  ;;  %vm339_vm7 = vcmp.eq.s32.totalorder %v899_v12, %v859_v41 }
  0xcc   :  { %650 = vst [vmem:[#allocation8 + $0x38] sm:$0xff] %v618_v6  ;;  %vm1105_vm12 = vmor %vm334_vm4, %vm378_vm5  ;;  %vm337_vm5 = vcmp.eq.s32.totalorder %v890_v10, %v859_v41  ;;  %vm338_vm4 = vcmp.eq.s32.totalorder %v896_v11, %v859_v41 }
  0xcd   :  { %vm1113_vm1 = vmor %vm335_vm6, %vm379_vm8  ;;  %vm362_vm8 = vcmp.eq.s32.totalorder %v871_v1, %v865_v57 }
  0xce   :  { %vm1125_vm10 = vmor %vm336_vm0, %vm380_vm9  ;;  %vm323_vm9 = vcmp.eq.s32.totalorder %v899_v12, %v861_v43 }
  0xcf   :  { %vm1140_vm2 = vmor %vm337_vm5, %vm381_vm13  ;;  %vm367_vm13 = vcmp.eq.s32.totalorder %v899_v12, %v865_v57 }
  0xd0   :  { %vm1153_vm6 = vmor %vm338_vm4, %vm382_vm3  ;;  %vm340_vm3 = vcmp.eq.s32.totalorder %v919_v17, %v859_v41  ;;  %vm1700_vm4 = vcmp.eq.s32.totalorder %v899_v12, %v887_v9  ;;  %v1704_v41 = vmov 0 }
  0xd1   :  { %v1697_v19 = vsel %vm1153_vm6, 4294967295, %v1696_v19  ;;  %vm1168_vm0 = vmor %vm317_vm15, %vm361_vm14  ;;  %vm1703_vm14 = vcmp.eq.s32.totalorder %v871_v1, %v861_v43  ;;  %vm1734_vm6 = vcmp.eq.s32.totalorder %v882_v8, %v428_v14 }
  0xd2   :  { %v1699_v20 = vsel %vm1168_vm0, 4294967295, %v1698_v20  ;;  %vm1177_vm5 = vmor %vm339_vm7, %vm1700_vm4  ;;  %vm1706_vm7 = vcmp.eq.s32.totalorder %v919_v17, %v887_v9  ;;  %v1711_v9 = vmov 0 }
  0xd3   :  { %v1702_v21 = vsel %vm1177_vm5, 4294967295, %v1701_v21  ;;  %vm1192_vm0 = vmor %vm1703_vm14, %vm362_vm8  ;;  %vm1709_vm8 = vcmp.eq.s32.totalorder %v874_v2, %v865_v57  ;;  %vm1710_vm14 = vcmp.eq.s32.totalorder %v874_v2, %v861_v43  ;;  %vm1730_vm5 = vcmp.eq.s32.totalorder %v896_v11, %v865_v57 }
  0xd4   :  { %v1705_v41 = vsel %vm1192_vm0, 4294967295, %v1704_v41  ;;  %vm1199_vm4 = vmor %vm340_vm3, %vm1706_vm7  ;;  %vm1713_vm7 = vcmp.eq.s32.totalorder %v867_v58, %v428_v14 }
  0xd5   :  { %v1708_v23 = vsel %vm1199_vm4, 4294967295, %v1707_v23  ;;  %vm1214_vm0 = vmor %vm1710_vm14, %vm1709_vm8  ;;  %vm1716_vm8 = vcmp.eq.s32.totalorder %v882_v8, %v865_v57  ;;  %vm1717_vm14 = vcmp.eq.s32.totalorder %v882_v8, %v861_v43  ;;  %vm368_vm4 = vcmp.eq.s32.totalorder %v919_v17, %v865_v57 }
  0xd6   :  { %v1712_v9 = vsel %vm1214_vm0, 4294967295, %v1711_v9  ;;  %vm1223_vm15 = vmor %vm1097_vm11, %vm1713_vm7  ;;  %vm457_vm11 = vcmp.eq.s32.totalorder %v890_v10, %v428_v14  ;;  %vm1720_vm7 = vcmp.eq.s32.totalorder %v871_v1, %v428_v14 }
  0xd7   :  { %v1715_v26 = vsel %vm1223_vm15, 4294967295, %v1714_v26  ;;  %vm1237_vm3 = vmor %vm1717_vm14, %vm1716_vm8  ;;  %vm324_vm15 = vcmp.eq.s32.totalorder %v919_v17, %v861_v43  ;;  %vm1723_vm8 = vcmp.eq.s32.totalorder %v890_v10, %v865_v57  ;;  %vm1724_vm14 = vcmp.eq.s32.totalorder %v890_v10, %v861_v43 }
  0xd8   :  { %v1719_v27 = vsel %vm1237_vm3, 4294967295, %v1718_v27  ;;  %vm1246_vm0 = vmor %vm1105_vm12, %vm1720_vm7  ;;  %vm458_vm12 = vcmp.eq.s32.totalorder %v896_v11, %v428_v14  ;;  %vm1727_vm7 = vcmp.eq.s32.totalorder %v874_v2, %v428_v14  ;;  %v1741_v57 = vmov 0 }
  0xd9   :  { %v1722_v28 = vsel %vm1246_vm0, 4294967295, %v1721_v28  ;;  %vm1260_vm3 = vmor %vm1724_vm14, %vm1723_vm8  ;;  %vm1731_vm8 = vcmp.eq.s32.totalorder %v896_v11, %v861_v43  ;;  %v1739_v43 = vmov 0 }
  0xda   :  { %v1726_v25 = vsel %vm1260_vm3, 4294967295, %v1725_v25  ;;  %vm1269_vm0 = vmor %vm1113_vm1, %vm1727_vm7  ;;  %vm459_vm3 = vcmp.eq.s32.totalorder %v899_v12, %v428_v14 }
  0xdb   :  { %v1729_v29 = vsel %vm1269_vm0, 4294967295, %v1728_v29  ;;  %vm1279_vm14 = vmor %vm1731_vm8, %vm1730_vm5  ;;  %vm437_vm5 = vcmp.eq.s32.totalorder %v867_v58, %v951_v22  ;;  %vm460_vm8 = vcmp.eq.s32.totalorder %v919_v17, %v428_v14 }
  0xdc   :  { %v1733_v31 = vsel %vm1279_vm14, 4294967295, %v1732_v31  ;;  %vm1288_vm1 = vmor %vm1125_vm10, %vm1734_vm6  ;;  %vm438_vm10 = vcmp.eq.s32.totalorder %v871_v1, %v951_v22  ;;  %vm1743_vm6 = vnez %v1697_v19 }
  0xdd   :  { %vm1292_vm7 = vmor %vm323_vm9, %vm367_vm13  ;;  %vm529_vm13 = vcmp.eq.s32.totalorder %v867_v58, %v504_v30 }
  0xde   :  { %v1738_v33 = vsel %vm1292_vm7, 4294967295, %v1737_v33  ;;  %vm1301_vm14 = vmor %vm1140_vm2, %vm457_vm11  ;;  %vm439_vm2 = vcmp.eq.s32.totalorder %v874_v2, %v951_v22  ;;  %vm1746_vm11 = vnez %v1702_v21 }
  0xdf   :  { %v1740_v43 = vsel %vm1301_vm14, 4294967295, %v1739_v43  ;;  %vm1305_vm0 = vmor %vm324_vm15, %vm368_vm4  ;;  %vm530_vm4 = vcmp.eq.s32.totalorder %v871_v1, %v504_v30 }
  0xe0   :  { %v1742_v57 = vsel %vm1305_vm0, 4294967295, %v1741_v57  ;;  %vm1313_vm9 = vmor %vm1743_vm6, %vm458_vm12  ;;  %vm440_vm0 = vcmp.eq.s32.totalorder %v882_v8, %v951_v22  ;;  %vm1749_vm12 = vnez %v1699_v20 }
  0xe1   :  { %v1745_v34 = vsel %vm1313_vm9, 4294967295, %v1744_v34  ;;  %vm1322_vm15 = vmor %vm1746_vm11, %vm459_vm3  ;;  %vm1752_vm9 = vnez %v1708_v23  ;;  %vm531_vm3 = vcmp.eq.s32.totalorder %v874_v2, %v504_v30  ;;  %vm533_vm11 = vcmp.eq.s32.totalorder %v890_v10, %v504_v30 }
  0xe2   :  { %v1748_v39 = vsel %vm1322_vm15, 4294967295, %v1747_v39  ;;  %vm1331_vm6 = vmor %vm1749_vm12, %vm437_vm5  ;;  %vm1755_vm15 = vnez %v1705_v41  ;;  %vm1758_vm12 = vnez %v1715_v26  ;;  %vm443_vm5 = vcmp.eq.s32.totalorder %v899_v12, %v951_v22 }
  0xe3   :  { %v1751_v40 = vsel %vm1331_vm6, 4294967295, %v1750_v40  ;;  %vm1337_vm7 = vmor %vm1752_vm9, %vm460_vm8  ;;  %vm1759_vm9 = vnez %v1712_v9  ;;  %v1803_v9 = vmov 0 }
  0xe4   :  { %v1754_v35 = vsel %vm1337_vm7, 4294967295, %v1753_v35  ;;  %vm1346_vm14 = vmor %vm1755_vm15, %vm438_vm10  ;;  %vm1762_vm10 = vnez %v1722_v28 }
  0xe5   :  { %vm561_vm6 = vmor %vm1758_vm12, %vm529_vm13  ;;  %vm1763_vm13 = vnez %v1719_v27 }
  0xe6   :  { %vm1357_vm7 = vmor %vm1759_vm9, %vm439_vm2  ;;  %v635_v38 = vsel %vm561_vm6, %v1015_v46, 0.0  ;;  %vm1766_vm9 = vnez %v1729_v29  ;;  %vm1767_vm6 = vcmp.eq.s32.totalorder %v890_v10, %v951_v22  ;;  %v1815_v29 = vmov 0 }
  0xe7   :  { %vm562_vm15 = vmor %vm1762_vm10, %vm530_vm4  ;;  %667 = vst [vmem:[#allocation8 + $0xc0] sm:$0xff] %v635_v38  ;;  %vm1773_vm4 = vnez %v1733_v31 }
  0xe8   :  { %vm1369_vm12 = vmor %vm1763_vm13, %vm440_vm0  ;;  %v636_v47 = vsel %vm562_vm15, %v1025_v44, 0.0  ;;  %vm1768_vm0 = vnez %v1726_v25  ;;  %v501_v25 = vpop.permute.xlu1 %500 }
  0xe9   :  { %vm563_vm8 = vmor %vm1766_vm9, %vm531_vm3  ;;  %vm1771_vm3 = vcmp.eq.s32.totalorder %v882_v8, %v504_v30  ;;  %668 = vst [vmem:[#allocation8 + $0xc8] sm:$0xff] %v636_v47  ;;  %vm1772_vm9 = vcmp.eq.s32.totalorder %v896_v11, %v951_v22 }
  0xea   :  { %vm1384_vm10 = vmor %vm1768_vm0, %vm1767_vm6  ;;  %v637_v54 = vsel %vm563_vm8, %v1035_v55, 0.0  ;;  %vm536_vm6 = vcmp.eq.s32.totalorder %v919_v17, %v504_v30  ;;  %vm1776_vm0 = vnez %v1740_v43 }
  0xeb   :  { %vm564_vm15 = vmor %vm1288_vm1, %vm1771_vm3  ;;  %669 = vst [vmem:[#allocation8 + $0xd0] sm:$0xff] %v637_v54  ;;  %vm1777_vm1 = vnez %v1738_v33  ;;  %vm1781_vm3 = vnez %v1745_v34 }
  0xec   :  { %vm1399_vm2 = vmor %vm1773_vm4, %vm1772_vm9  ;;  %v638_v51 = vsel %vm564_vm15, %v1041_v49, 0.0  ;;  %vm1780_vm4 = vcmp.eq.s32.totalorder %v896_v11, %v504_v30  ;;  %vm1782_vm15 = vcmp.eq.s32.totalorder %v919_v17, %v951_v22 }
  0xed   :  { %v1775_v52 = vsel %vm1399_vm2, 4294967295, %v1774_v52  ;;  %vm565_vm13 = vmor %vm1776_vm0, %vm533_vm11  ;;  %670 = vst [vmem:[#allocation8 + $0xd8] sm:$0xff] %v638_v51  ;;  %vm513_vm11 = vcmp.eq.s32.totalorder %v867_v58, %v498_v42  ;;  %vm1783_vm0 = vnez %v1742_v57 }
  0xee   :  { %vm1414_vm8 = vmor %vm1777_vm1, %vm443_vm5  ;;  %v639_v60 = vsel %vm565_vm13, %v1046_v50, 0.0  ;;  %vm1786_vm5 = vcmp.eq.s32.totalorder %v899_v12, %v504_v30  ;;  %vm1787_vm1 = vnez %v1748_v39  ;;  %vm514_vm13 = vcmp.eq.s32.totalorder %v871_v1, %v498_v42 }
  0xef   :  { %v1779_v56 = vsel %vm1414_vm8, 4294967295, %v1778_v56  ;;  %vm566_vm9 = vmor %vm1781_vm3, %vm1780_vm4  ;;  %671 = vst [vmem:[#allocation8 + $0xe0] sm:$0xff] %v639_v60  ;;  %vm1788_vm4 = vnez %v1754_v35 }
  0xf0   :  { %vm1429_vm2 = vmor %vm1783_vm0, %vm1782_vm15  ;;  %v640_v0 = vsel %vm566_vm9, %v1052_v48, 0.0  ;;  %vm515_vm15 = vcmp.eq.s32.totalorder %v874_v2, %v498_v42  ;;  %vm516_vm0 = vcmp.eq.s32.totalorder %v882_v8, %v498_v42  ;;  %vm517_vm9 = vcmp.eq.s32.totalorder %v890_v10, %v498_v42 }
  0xf1   :  { %v1785_v63 = vsel %vm1429_vm2, 4294967295, %v1784_v63  ;;  %vm567_vm8 = vmor %vm1787_vm1, %vm1786_vm5  ;;  %672 = vst [vmem:[#allocation8 + $0xe8] sm:$0xff] %v640_v0  ;;  %vm1789_vm5 = vnez %v1751_v40 }
  0xf2   :  { %vm568_vm3 = vmor %vm1788_vm4, %vm536_vm6  ;;  %v641_v22 = vsel %vm567_vm8, %v1058_v59, 0.0  ;;  %vm518_vm6 = vcmp.eq.s32.totalorder %v896_v11, %v498_v42  ;;  %vm519_vm4 = vcmp.eq.s32.totalorder %v899_v12, %v498_v42 }
  0xf3   :  { %v642_v4 = vsel %vm568_vm3, %v1068_v62, 0.0  ;;  %673 = vst [vmem:[#allocation8 + $0xf0] sm:$0xff] %v641_v22  ;;  %vm545_vm1 = vmor %vm1789_vm5, %vm513_vm11  ;;  %vm1791_vm3 = vnez %v1779_v56 }
  0xf4   :  { %674 = vst [vmem:[#allocation8 + $0xf8] sm:$0xff] %v642_v4  ;;  %vm546_vm2 = vmor %vm1346_vm14, %vm514_vm13  ;;  %v619_v5 = vsel %vm545_vm1, %v1015_v46, 0.0  ;;  %vm520_vm14 = vcmp.eq.s32.totalorder %v919_v17, %v498_v42  ;;  %vm325_vm1 = vcmp.eq.s32.totalorder %v867_v58, %v855_v24 }
  0xf5   :  { %vm547_vm8 = vmor %vm1357_vm7, %vm515_vm15  ;;  %v620_v6 = vsel %vm546_vm2, %v1025_v44, 0.0  ;;  %651 = vst [vmem:[#allocation8 + $0x40] sm:$0xff] %v619_v5  ;;  %vm1790_vm7 = vnez %v1775_v52 }
  0xf6   :  { %vm548_vm11 = vmor %vm1369_vm12, %vm516_vm0  ;;  %v621_v7 = vsel %vm547_vm8, %v1035_v55, 0.0  ;;  %652 = vst [vmem:[#allocation8 + $0x48] sm:$0xff] %v620_v6  ;;  %vm369_vm12 = vcmp.eq.s32.totalorder %v867_v58, %v876_v3  ;;  %vm1792_vm0 = vnez %v1785_v63  ;;  %vm372_vm8 = vcmp.eq.s32.totalorder %v882_v8, %v876_v3 }
  0xf7   :  { %vm549_vm13 = vmor %vm1384_vm10, %vm517_vm9  ;;  %v622_v13 = vsel %vm548_vm11, %v1041_v49, 0.0  ;;  %653 = vst [vmem:[#allocation8 + $0x50] sm:$0xff] %v621_v7  ;;  %vm370_vm10 = vcmp.eq.s32.totalorder %v871_v1, %v876_v3  ;;  %vm371_vm9 = vcmp.eq.s32.totalorder %v874_v2, %v876_v3  ;;  %vm327_vm11 = vcmp.eq.s32.totalorder %v874_v2, %v855_v24 }
  0xf8   :  { %vm550_vm2 = vmor %vm1790_vm7, %vm518_vm6  ;;  %v623_v14 = vsel %vm549_vm13, %v1046_v50, 0.0  ;;  %654 = vst [vmem:[#allocation8 + $0x58] sm:$0xff] %v622_v13  ;;  %vm326_vm6 = vcmp.eq.s32.totalorder %v871_v1, %v855_v24  ;;  %vm328_vm7 = vcmp.eq.s32.totalorder %v882_v8, %v855_v24 }
  0xf9   :  { %vm551_vm15 = vmor %vm1791_vm3, %vm519_vm4  ;;  %v624_v15 = vsel %vm550_vm2, %v1052_v48, 0.0  ;;  %655 = vst [vmem:[#allocation8 + $0x60] sm:$0xff] %v623_v14  ;;  %vm374_vm2 = vcmp.eq.s32.totalorder %v896_v11, %v876_v3  ;;  %vm329_vm3 = vcmp.eq.s32.totalorder %v890_v10, %v855_v24 }
  0xfa   :  { %vm552_vm5 = vmor %vm1792_vm0, %vm520_vm14  ;;  %v625_v16 = vsel %vm551_vm15, %v1058_v59, 0.0  ;;  %656 = vst [vmem:[#allocation8 + $0x68] sm:$0xff] %v624_v15  ;;  %vm373_vm14 = vcmp.eq.s32.totalorder %v890_v10, %v876_v3  ;;  %vm375_vm15 = vcmp.eq.s32.totalorder %v899_v12, %v876_v3  ;;  %vm330_vm0 = vcmp.eq.s32.totalorder %v896_v11, %v855_v24 }
  0xfb   :  { %v626_v18 = vsel %vm552_vm5, %v1068_v62, 0.0  ;;  %657 = vst [vmem:[#allocation8 + $0x70] sm:$0xff] %v625_v16  ;;  %vm1485_vm4 = vmor %vm325_vm1, %vm369_vm12  ;;  %vm376_vm5 = vcmp.eq.s32.totalorder %v919_v17, %v876_v3 }
  0xfc   :  { %658 = vst [vmem:[#allocation8 + $0x78] sm:$0xff] %v626_v18  ;;  %vm1493_vm13 = vmor %vm326_vm6, %vm370_vm10 }
  0xfd   :  { %vm1501_vm12 = vmor %vm327_vm11, %vm371_vm9  ;;  %vm331_vm9 = vcmp.eq.s32.totalorder %v899_v12, %v855_v24  ;;  %vm332_vm11 = vcmp.eq.s32.totalorder %v919_v17, %v855_v24 }
  0xfe   :  { %vm1509_vm10 = vmor %vm328_vm7, %vm372_vm8  ;;  %vm445_vm8 = vcmp.eq.s32.totalorder %v867_v58, %v1061_v61 }
  0xff   :  { %vm1517_vm1 = vmor %vm329_vm3, %vm373_vm14  ;;  %vm446_vm14 = vcmp.eq.s32.totalorder %v871_v1, %v1061_v61 }
 0x100   :  { %vm1523_vm6 = vmor %vm330_vm0, %vm374_vm2  ;;  %vm447_vm2 = vcmp.eq.s32.totalorder %v874_v2, %v1061_v61  ;;  %vm448_vm0 = vcmp.eq.s32.totalorder %v882_v8, %v1061_v61 }
 0x101   :  { %v1804_v9 = vsel %vm1523_vm6, 4294967295, %v1803_v9  ;;  %vm1531_vm7 = vmor %vm331_vm9, %vm375_vm15  ;;  %vm449_vm15 = vcmp.eq.s32.totalorder %v890_v10, %v1061_v61  ;;  %vm450_vm9 = vcmp.eq.s32.totalorder %v896_v11, %v1061_v61 }
 0x102   :  { %vm1537_vm3 = vmor %vm332_vm11, %vm376_vm5 }
 0x103   :  { %vm1547_vm6 = vmor %vm1485_vm4, %vm445_vm8  ;;  %vm451_vm4 = vcmp.eq.s32.totalorder %v899_v12, %v1061_v61 }
 0x104   :  { %vm1555_vm5 = vmor %vm1493_vm13, %vm446_vm14  ;;  %vm452_vm13 = vcmp.eq.s32.totalorder %v919_v17, %v1061_v61  ;;  %v1824_v61 = vmov 0 }
 0x105   :  { %vm1563_vm11 = vmor %vm1501_vm12, %vm447_vm2  ;;  %vm1819_vm12 = vnez %v1804_v9 }
 0x106   :  { %vm1571_vm8 = vmor %vm1509_vm10, %vm448_vm0  ;;  %vm521_vm10 = vcmp.eq.s32.totalorder %v867_v58, %v501_v25 }
 0x107   :  { %v1816_v29 = vsel %vm1571_vm8, 4294967295, %v1815_v29  ;;  %vm1579_vm14 = vmor %vm1517_vm1, %vm449_vm15  ;;  %vm522_vm8 = vcmp.eq.s32.totalorder %v871_v1, %v501_v25  ;;  %vm523_vm15 = vcmp.eq.s32.totalorder %v874_v2, %v501_v25 }
 0x108   :  { %vm1585_vm2 = vmor %vm1819_vm12, %vm450_vm9  ;;  %vm524_vm9 = vcmp.eq.s32.totalorder %v882_v8, %v501_v25 }
 0x109   :  { %vm1592_vm0 = vmor %vm1531_vm7, %vm451_vm4  ;;  %vm525_vm7 = vcmp.eq.s32.totalorder %v890_v10, %v501_v25 }
 0x10a   :  { %v1823_v32 = vsel %vm1592_vm0, 4294967295, %v1822_v32  ;;  %vm1599_vm1 = vmor %vm1537_vm3, %vm452_vm13  ;;  %vm526_vm0 = vcmp.eq.s32.totalorder %v896_v11, %v501_v25  ;;  %vm527_vm13 = vcmp.eq.s32.totalorder %v899_v12, %v501_v25 }
 0x10b   :  { %v1825_v61 = vsel %vm1599_vm1, 4294967295, %v1824_v61  ;;  %vm553_vm12 = vmor %vm1547_vm6, %vm521_vm10  ;;  %vm1826_vm1 = vnez %v1816_v29  ;;  %vm1827_vm10 = vnez %v1823_v32 }
 0x10c   :  { %vm554_vm4 = vmor %vm1555_vm5, %vm522_vm8  ;;  %v627_v58 = vsel %vm553_vm12, %v1015_v46, 0.0  ;;  %vm528_vm5 = vcmp.eq.s32.totalorder %v919_v17, %v501_v25 }
 0x10d   :  { %vm555_vm3 = vmor %vm1563_vm11, %vm523_vm15  ;;  %v628_v1 = vsel %vm554_vm4, %v1025_v44, 0.0  ;;  %659 = vst [vmem:[#allocation8 + $0x80] sm:$0xff] %v627_v58  ;;  %vm1828_vm15 = vnez %v1825_v61 }
 0x10e   :  { %vm556_vm6 = vmor %vm1826_vm1, %vm524_vm9  ;;  %v629_v2 = vsel %vm555_vm3, %v1035_v55, 0.0  ;;  %660 = vst [vmem:[#allocation8 + $0x88] sm:$0xff] %v628_v1 }
 0x10f   :  { %vm557_vm8 = vmor %vm1579_vm14, %vm525_vm7  ;;  %v630_v8 = vsel %vm556_vm6, %v1041_v49, 0.0  ;;  %661 = vst [vmem:[#allocation8 + $0x90] sm:$0xff] %v629_v2 }
 0x110   :  { %vm558_vm11 = vmor %vm1585_vm2, %vm526_vm0  ;;  %v631_v10 = vsel %vm557_vm8, %v1046_v50, 0.0  ;;  %662 = vst [vmem:[#allocation8 + $0x98] sm:$0xff] %v630_v8 }
 0x111   :  { %vm559_vm1 = vmor %vm1827_vm10, %vm527_vm13  ;;  %v632_v11 = vsel %vm558_vm11, %v1052_v48, 0.0  ;;  %663 = vst [vmem:[#allocation8 + $0xa0] sm:$0xff] %v631_v10 }
 0x112   :  { %vm560_vm14 = vmor %vm1828_vm15, %vm528_vm5  ;;  %v633_v12 = vsel %vm559_vm1, %v1058_v59, 0.0  ;;  %664 = vst [vmem:[#allocation8 + $0xa8] sm:$0xff] %v632_v11 }
 0x113   :  { %v634_v17 = vsel %vm560_vm14, %v1068_v62, 0.0  ;;  %665 = vst [vmem:[#allocation8 + $0xb0] sm:$0xff] %v633_v12 }
 0x114   :  { %666 = vst [vmem:[#allocation8 + $0xb8] sm:$0xff] %v634_v17 }
 0x115   :  { %766 = shalt.err (!%p763_p6)
}
 0x116   :  { %s767_s21 = scalar_lea.hbm %s1651_s3, 4096 }
 0x117   :  { %p768_p7 = scmp.ne.s32.totalorder %s1651_s3, %s767_s21  ;;  %p771_p8 = scmp.lt.u32.totalorder %s767_s21, %s1651_s3 }
 0x119   :  { %p773_p9 = pnand %p771_p8, %p768_p7 }
 0x11b   :  { %776 = shalt.err (!%p773_p9)
}
 0x11c   :  { %686 = dma.vmem_to_hbm [thread:$0]  %s681_s17, 4096, %s1651_s3, [#allocation5], %s784_s22, %s784_s22, %s785_s23  }
 0x11d   :  { %781 = dma.done.wait [#allocation5], 4096  }
 0x11e   :  { %782 = vsyncadd [#allocation5], 4294963200 }
 0x11f   :  { %690 = vsyncpa [#allocation4], 1 }
 0x120   :  { %691 = vsyncpa [#allocation7], 1 }
 0x121   :  { %692 = vsyncpa [#allocation5], 1 }

</bundles_post_ra>
